<compile_context>
chip_gen: v5e
topology: v5e:2x2
jax: 0.10.0
libtpu: 0.0.40
codegen_flags: <defaults>
</compile_context>

<pallas_src>
import functools

import numpy as np
import jax
import jax.numpy as jnp
from jax import lax
from jax.experimental import pallas as pl
from jax.experimental.pallas import tpu as pltpu


def _round_up(x, m):
    return (x + m - 1) // m * m


def _vmem_capacity_bytes():
    try:
        return int(pltpu.get_tpu_info().vmem_capacity_bytes)
    except Exception:
        return 64 * 1024 * 1024  # v7x-safe fallback


def _build_band(L, Lp, kernel_size):
    """(Lp, Lp) f32 matrix such that band @ x == moving average with replicate pad."""
    p = (kernel_size - 1) // 2
    rows = np.repeat(np.arange(L), kernel_size)
    cols = np.clip(
        (np.arange(L)[:, None] - p + np.arange(kernel_size)[None, :]).ravel(),
        0, L - 1)
    band = np.zeros((Lp, Lp), np.float32)
    np.add.at(band, (rows, cols), 1.0 / kernel_size)
    return band


def _decomp_kernel(band_ref, x_ref, res_ref, mean_ref, *, precision):
    x = x_ref[0]                       # (Lp, tc) tile of one batch element
    band = band_ref[...]               # (Lp, Lp), VMEM resident
    mean = jnp.dot(band, x, precision=precision,
                   preferred_element_type=jnp.float32)      # MXU
    res_ref[0] = (x.astype(jnp.float32) - mean).astype(res_ref.dtype)
    mean_ref[0] = mean.astype(mean_ref.dtype)


def _plan_tiles(B, Lp, Cp, in_dtype, out_dtype, band_bytes_total):
    """Pick a lane-dense channel tile and a scoped-VMEM limit, generation-aware."""
    cap = _vmem_capacity_bytes()
    budget = int(0.40 * cap)
    in_b = jnp.dtype(in_dtype).itemsize
    out_b = jnp.dtype(out_dtype).itemsize

    def footprint(tc):
        plane = Lp * tc
        # band (counted double-buffered, conservatively) + double-buffered input
        # + 2 double-buffered outputs + ~3 f32 in-kernel temporaries.
        return 2 * band_bytes_total + plane * (2 * in_b + 4 * out_b + 3 * 4)

    cands = [c for c in range(128, Cp + 1, 128) if Cp % c == 0]
    tc = cands[0]
    for c in cands:
        if footprint(c) <= budget:
            tc = c
    # Prefer >= 8 pipeline steps (amortize per-step overhead, keep DMA overlapped)
    # when the channel axis allows it.
    while B * (Cp // tc) < 8:
        smaller = [c for c in cands if c < tc]
        if not smaller:
            break
        tc = smaller[-1]

    vmem_limit = max(32 * 1024 * 1024,
                     min(int(0.7 * cap), footprint(tc) + 8 * 1024 * 1024))
    return tc, int(vmem_limit)


def series_decomp(x, kernel_size):
    """Pallas TPU equivalent of PyTorch series_decomp.forward: returns (res, moving_mean)."""
    assert kernel_size % 2 == 1, "series_decomp assumes an odd kernel_size"
    B, L, C = x.shape
    out_dtype = x.dtype

    Lp = _round_up(L, 8)     # sublane alignment of the time axis
    Cp = _round_up(C, 128)   # lane-dense channel axis (loads, adds, stores)
    # TODO(synk): for very long sequences (where the (Lp, Lp) band no longer fits
    # VMEM) tile L with a haloed/overlapping index_map instead of a full-L band.

    band_np = _build_band(L, Lp, kernel_size)
    if x.dtype == jnp.bfloat16:
        band = jnp.asarray(band_np, dtype=jnp.bfloat16)   # native MXU operand on v6e/v7x
        precision = lax.Precision.DEFAULT
    else:
        band = jnp.asarray(band_np, dtype=jnp.float32)
        precision = lax.Precision.HIGHEST

    x_in = x
    if (Lp, Cp) != (L, C):
        x_in = jnp.pad(x, ((0, 0), (0, Lp - L), (0, Cp - C)))

    tc, vmem_limit = _plan_tiles(B, Lp, Cp, x_in.dtype, out_dtype,
                                 band.size * band.dtype.itemsize)
    n_ct = Cp // tc

    # Put an even (or at least non-trivial) "parallel" axis first so v7x's two
    # TensorCores both get work; no effect on single-core v5e/v6e.
    if B % 2 == 0 or n_ct % 2 == 1:
        grid = (B, n_ct)
        x_map = lambda b, c: (b, 0, c)
        band_map = lambda b, c: (0, 0)
    else:
        grid = (n_ct, B)
        x_map = lambda c, b: (b, 0, c)
        band_map = lambda c, b: (0, 0)

    kernel = functools.partial(_decomp_kernel, precision=precision)

    res, mean = pl.pallas_call(
        kernel,
        out_shape=(
            jax.ShapeDtypeStruct((B, Lp, Cp), out_dtype),
            jax.ShapeDtypeStruct((B, Lp, Cp), out_dtype),
        ),
        grid=grid,
        in_specs=[
            pl.BlockSpec((Lp, Lp), band_map),      # VMEM-resident band matrix
            pl.BlockSpec((1, Lp, tc), x_map),
        ],
        out_specs=(
            pl.BlockSpec((1, Lp, tc), x_map),
            pl.BlockSpec((1, Lp, tc), x_map),
        ),
        compiler_params=pltpu.CompilerParams(
            dimension_semantics=("parallel", "parallel"),
            vmem_limit_bytes=vmem_limit),
    )(band, x_in)

    if (Lp, Cp) != (L, C):
        res = res[:, :L, :C]
        mean = mean[:, :L, :C]
    return res, mean


def _reference(x, kernel_size):
    """Pure-JAX reference replicating the PyTorch semantics."""
    p = (kernel_size - 1) // 2
    front = jnp.repeat(x[:, 0:1, :], p, axis=1)
    end = jnp.repeat(x[:, -1:, :], p, axis=1)
    xpad = jnp.concatenate([front, x, end], axis=1)
    L = x.shape[1]
    windows = jnp.stack([xpad[:, j:j + L, :] for j in range(kernel_size)], axis=0)
    mean = jnp.mean(windows, axis=0)
    return x - mean, mean


if __name__ == "__main__":
    key = jax.random.PRNGKey(0)

    cases = [
        # (B, L, C, kernel_size)
        (2, 16, 8, 5),      # small, non-lane-dense C -> exercises the pad-to-128 path
        (2, 32, 128, 25),   # lane-dense channels, Autoformer-style kernel size
        (3, 24, 256, 7),    # odd batch -> channel-tile axis leads the grid (v7x balance)
    ]
    for i, (B, L, C, ks) in enumerate(cases):
        x = jax.random.normal(jax.random.fold_in(key, i), (B, L, C), dtype=jnp.float32)
        res, mean = series_decomp(x, ks)
        jax.block_until_ready((res, mean))
        res_ref, mean_ref = _reference(x, ks)
        assert res.shape == x.shape and mean.shape == x.shape
        assert jnp.allclose(mean, mean_ref, atol=1e-4), f"mean mismatch (case {i})"
        assert jnp.allclose(res, res_ref, atol=1e-4), f"res mismatch (case {i})"

    print("KERNEL_OK")
</pallas_src>

<mosaic_0001>
module attributes {stable_mosaic.version = 11 : i64} {
  func.func @_decomp_kernel(%arg0: i32, %arg1: i32, %arg2: memref<16x16xf32, #tpu.memory_space<vmem>>, %arg3: memref<1x16x128xf32, #tpu.memory_space<vmem>>, %arg4: memref<1x16x128xf32, #tpu.memory_space<vmem>>, %arg5: memref<1x16x128xf32, #tpu.memory_space<vmem>>) attributes {dimension_semantics = [#tpu.dimension_semantics<parallel>, #tpu.dimension_semantics<parallel>], iteration_bounds = array<i64: 2, 1>, scalar_prefetch = 0 : i64, scratch_operands = 0 : i64, tpu.core_type = #tpu.core_type<tc>, window_params = [{pipeline_mode = #tpu.pipeline_mode<synchronous>, transform_indices = @transform_0, window_bounds = array<i64: 16, 16>}, {transform_indices = @transform_1, window_bounds = array<i64: 1, 16, 128>}, {transform_indices = @transform_2, window_bounds = array<i64: 1, 16, 128>}, {transform_indices = @transform_3, window_bounds = array<i64: 1, 16, 128>}]} {
    %c0 = arith.constant 0 : index
    %c0_0 = arith.constant 0 : index
    %c0_1 = arith.constant 0 : index
    %0 = vector.load %arg3[%c0, %c0_0, %c0_1] : memref<1x16x128xf32, #tpu.memory_space<vmem>>, vector<1x16x128xf32>
    %1 = vector.shape_cast %0 : vector<1x16x128xf32> to vector<16x128xf32>
    %c0_2 = arith.constant 0 : index
    %c0_3 = arith.constant 0 : index
    %2 = vector.load %arg2[%c0_2, %c0_3] : memref<16x16xf32, #tpu.memory_space<vmem>>, vector<16x16xf32>
    %cst = arith.constant dense<0.000000e+00> : vector<16x128xf32>
    %3 = tpu.matmul %2, %1, %cst {dimension_numbers = #tpu.dot_dimension_numbers<[1], [0], [0], [1], [0, 0, 1, 1], [], []>, precision = #tpu.contract_precision<fp32>} : vector<16x16xf32>, vector<16x128xf32>, vector<16x128xf32> -> vector<16x128xf32>
    %4 = arith.subf %1, %3 : vector<16x128xf32>
    %c0_4 = arith.constant 0 : index
    %c0_5 = arith.constant 0 : index
    %c0_6 = arith.constant 0 : index
    %5 = vector.load %arg4[%c0_4, %c0_5, %c0_6] : memref<1x16x128xf32, #tpu.memory_space<vmem>>, vector<1x16x128xf32>
    %6 = vector.shape_cast %5 : vector<1x16x128xf32> to vector<16x128xf32>
    %7 = vector.shape_cast %4 : vector<16x128xf32> to vector<1x16x128xf32>
    tpu.vector_store %arg4[%c0_4, %c0_5, %c0_6], %7 {strides = array<i32>} : memref<1x16x128xf32, #tpu.memory_space<vmem>>, vector<1x16x128xf32>,
    %c0_7 = arith.constant 0 : index
    %c0_8 = arith.constant 0 : index
    %c0_9 = arith.constant 0 : index
    %8 = vector.load %arg5[%c0_7, %c0_8, %c0_9] : memref<1x16x128xf32, #tpu.memory_space<vmem>>, vector<1x16x128xf32>
    %9 = vector.shape_cast %8 : vector<1x16x128xf32> to vector<16x128xf32>
    %10 = vector.shape_cast %3 : vector<16x128xf32> to vector<1x16x128xf32>
    tpu.vector_store %arg5[%c0_7, %c0_8, %c0_9], %10 {strides = array<i32>} : memref<1x16x128xf32, #tpu.memory_space<vmem>>, vector<1x16x128xf32>,
    return
  }
  func.func @transform_0(%arg0: i32, %arg1: i32) -> (i32, i32) {
    %c0_i32 = arith.constant 0 : i32
    %c0_i32_0 = arith.constant 0 : i32
    %c0_i32_1 = arith.constant 0 : i32
    return %c0_i32, %c0_i32_0 : i32, i32
  }
  func.func @transform_1(%arg0: i32, %arg1: i32) -> (i32, i32, i32) {
    %c0_i32 = arith.constant 0 : i32
    %c0_i32_0 = arith.constant 0 : i32
    return %arg0, %c0_i32, %arg1 : i32, i32, i32
  }
  func.func @transform_2(%arg0: i32, %arg1: i32) -> (i32, i32, i32) {
    %c0_i32 = arith.constant 0 : i32
    %c0_i32_0 = arith.constant 0 : i32
    return %arg0, %c0_i32, %arg1 : i32, i32, i32
  }
  func.func @transform_3(%arg0: i32, %arg1: i32) -> (i32, i32, i32) {
    %c0_i32 = arith.constant 0 : i32
    %c0_i32_0 = arith.constant 0 : i32
    return %arg0, %c0_i32, %arg1 : i32, i32, i32
  }
}

</mosaic_0001>

<bundles_post_ra>
// kernel: tpu_custom_call.1
= control target key start
LH: loop header
LB: loop body
LE: loop exit
PB: predicated region body
PF: predicated region fallthrough
CT: control target
= control target key end

     0   :  { %s1128_s0 = inlined_call_operand.hbm [shape: f32[16,16], index: 0, kind: input, shape index: {}]   ;;  %s1129_s1 = inlined_call_operand.hbm [shape: f32[2,16,128], index: 1, kind: input, shape index: {}]   ;;  %s1130_s2 = inlined_call_operand.hbm [shape: f32[2,16,128], index: 2, kind: output, shape index: {0}]   ;;  %s1131_s3 = inlined_call_operand.hbm [shape: f32[2,16,128], index: 3, kind: output, shape index: {1}]  }
   0x1   :  { %1133 = sst [smem:[#allocation14_spill]] %s1128_s0 }
   0x2   :  { %9 = vsyncpa [#allocation3], 0 }
   0x3   :  { %10 = vsyncpa [#allocation6], 0 }
   0x4   :  { %12 = vsyncpa [#allocation6 + $0x1], 0 }
   0x5   :  { %13 = vsyncpa [#allocation4], 0 }
   0x6   :  { %15 = vsyncpa [#allocation4 + $0x1], 0 }
   0x7   :  { %16 = vsyncpa [#allocation9], 0 }
   0x8   :  { %18 = vsyncpa [#allocation9 + $0x1], 0  ;;  %s932_s12 = smov 0   ;;  %s934_s13 = smov 0  }
   0x9   :  { %s936_s14 = smov 0   ;;  %s938_s15 = smov 0  }
   0xa   :  { %s940_s16 = smov 0   ;;  %s942_s17 = smov 0  }
   0xb LB: > { %s617_s18 = sadd.s32 4294967295, %s905_s17   ;;  %s618_s19 = sadd.s32 4294967294, %s905_s17   ;;  %s905_s17 = sphi %s942_s17, %s24_s17   ;;  %s901_s16 = sphi %s940_s16, %s1147_s16   ;;  %s897_s15 = sphi %s938_s15, %s1146_s15   ;;  %s893_s14 = sphi %s936_s14, %s1145_s14   ;;  %s889_s13 = sphi %s934_s13, %s1144_s13   ;;  %s885_s12 = sphi %s932_s12, %s1143_s12  }
   0xc   : > { %p79_p0 = scmp.ne.s32.totalorder %s889_s13, %s885_s12  ;;  %p966_p1 = scmp.eq.s32.totalorder %s617_s18, 0 }
   0xd   : > { %p970_p2 = scmp.eq.s32.totalorder %s617_s18, 1  ;;  %p111_p3 = scmp.eq.s32.totalorder %s618_s19, 1 }
   0xe   : > { %p976_p4 = por %p966_p1, %p79_p0  ;;  %p619_p5 = scmp.ge.s32.totalorder %s905_s17, 1 }
   0xf   : > { %p981_p6 = por %p111_p3, %p79_p0  ;;  %p146_p7 = scmp.lt.s32.totalorder %s905_s17, 3 }
  0x10   : > { %s1138_s0 = sld [smem:[#allocation14_spill]]  ;;  %s907_s28 = smov [#allocation2]  }
  0x11   : > { %p989_p8 = pnand %p619_p5, %p146_p7  ;;  %s159_s29 = sshll.u32 %s907_s28, 4  ;;  %s160_s29 = int_to_ptr.vmem [resolvable:$true] %s159_s29 }
  0x12   : > { %p621_p11 = scmp.ge.s32.totalorder %s905_s17, 2  ;;  %s1132_s30 = smov 128  }
  0x13   : > { %p655_p9 = pneg %p989_p8  ;;  %s909_s4 = smov 8  }
  0x14   : > { %s36_s5 = sadd.s32 1, %s901_s16  ;;  %s66_s6 = sadd.s32 1, %s893_s14 }
  0x15   : > { %p656_p10 = pnand %p655_p9, %p966_p1  ;;  %p38_p12 = scmp.ge.s32.totalorder %s36_s5, 2 }
  0x16   : > { %s157_s26 = sshll.u32 %s1138_s0, 4  ;;  %p73_p13 = scmp.ne.s32.totalorder %s893_s14, %s889_s13  ;;  %s158_s26 = int_to_ptr.hbm [resolvable:$true] %s157_s26 }
  0x17   : > { %658 = dma.hbm_to_vmem [thread:$0]  (!%p656_p10), %s158_s26, 256, %s160_s29, [#allocation3], %s1132_s30, %s1132_s30, %s909_s4  }
  0x18   : > { %p74_p0 = scmp.eq.s32.totalorder %s905_s17, 0  ;;  %s1149_s5 = smov (%p38_p12, %s36_s5), 0 }
  0x19   : > { %p1014_p5 = por %p970_p2, %p73_p13  ;;  %s61_s9 = ssub.s32 %s901_s16, %s1149_s5 }
  0x1a   : > { %p1008_p3 = por %p74_p0, %p73_p13  ;;  %p671_p7 = scmp.lt.s32.totalorder %s905_s17, 2 }
  0x1b   : > { %p64_p9 = scmp.eq.s32.totalorder %s61_s9, 0  ;;  %s173_s10 = sand.u32 1, %s893_s14  }
  0x1c   : > { %s622_s11 = sshll.u32 %s173_s10, 4  ;;  %s638_s19 = sshll.u32 %s901_s16, 4 }
  0x1d   : > { %s1023_s18 = scalar_select %p64_p9, %s893_s14, %s66_s6  }
  0x1e   : > { %s183_s26 = scalar_lea.hbm %s1129_s1, %s638_s19  ;;  %s177_s28 = scalar_lea.vmem [#allocation5], %s622_s11 }
  0x1f   : > { %s186_s29 = sshll.u32 %s177_s28, 4  ;;  %s184_s21 = sshll.u32 %s183_s26, 4  ;;  %s187_s29 = int_to_ptr.vmem [resolvable:$true] %s186_s29  ;;  %s185_s21 = int_to_ptr.hbm [resolvable:$true] %s184_s21 }
  0x20   : > { %p660_p2 = pnand %p671_p7, %p1008_p3  ;;  %s174_s30 = scalar_lea.sflag [#allocation6], %s173_s10 }
  0x21   : > { %s1142_s0 = smov 128   ;;  %198 = sbr.rel (%p989_p8) target bundleno = 228 (0xe4), region = 28 }
  0x22   : > { %662 = dma.hbm_to_vmem [thread:$0]  (!%p660_p2), %s185_s21, 256, %s187_s29, %s174_s30, %s1142_s0, %s1142_s0, %s909_s4  }
  0x26   : > { %868 = dma.done.wait (%p966_p1), [#allocation3], 256  }
  0x27   : > { %870 = vsyncadd (%p966_p1), [#allocation3], 4294967040  ;;  %s1041_s6 = sand.u32 1, %s889_s13  }
  0x28   : > { %s1044_s7 = sshll.u32 %s1041_s6, 4  ;;  %s206_s9 = scalar_lea.sflag [#allocation6], %s1041_s6 }
  0x29   : > { %s209_s0 = scalar_lea.vmem [#allocation5], %s1044_s7 }
  0x2a   : > { %872 = dma.done.wait (%p976_p4), %s206_s9, 256  }
  0x2b   : > { %874 = vsyncadd (%p976_p4), %s206_s9, 4294967040  ;;  %vm242_vm0 = vcmask 130048   ;;  %v1052_v0 = vld [vmem:[%s209_s0 + $0x8] sm:$0xff]  ;;  %v1054_v1 = vld [vmem:[%s209_s0] sm:$0xff]  ;;  %s639_s20 = sshll.u32 %s897_s15, 4  ;;  %s237_s22 = scalar_lea.vmem [#allocation8], %s1044_s7 }
  0x2c   : > { %v241_v2 = vld [vmem:[#allocation2 + $0x8] sm:$0xff]  ;;  %v263_v3 = vand.u32 4294901760, %v1052_v0  ;;  %v265_v4 = vand.u32 4294901760, %v1054_v1  ;;  %v240_v6 = vld [vmem:[#allocation2] sm:$0xff]  ;;  %s481_s4 = scalar_lea.hbm %s1131_s3, %s639_s20  ;;  %s482_s10 = sshll.u32 %s237_s22, 4  ;;  %s483_s10 = int_to_ptr.vmem [resolvable:$true] %s482_s10 }
  0x2d   : > { %v247_v5 = vsel %vm242_vm0, %v241_v2, 0  ;;  %v244_v8 = vsel %vm242_vm0, %v240_v6, 0  ;;  %s463_s24 = scalar_lea.hbm %s1130_s2, %s639_s20  ;;  %s1070_s15 = scalar_lea.vmem [#allocation7], %s1044_s7 }
  0x2e   : > { %v275_v7 = vand.u32 4294901760, %v247_v5  ;;  %641 = vmatpush.msra.mxu2 %v263_v3  ;;  %v299_v9 = vsub.f32 %v1052_v0, %v263_v3  ;;  %v305_v10 = vsub.f32 %v1054_v1, %v265_v4  ;;  %264 = vmatpush.msra.mxu0 %v263_v3  ;;  %v267_v11 = vand.u32 4294901760, %v244_v8  ;;  %s464_s25 = sshll.u32 %s1070_s15, 4  ;;  %s484_s26 = sshll.u32 %s481_s4, 4  ;;  %s485_s26 = int_to_ptr.hbm [resolvable:$true] %s484_s26  ;;  %s1074_s25 = int_to_ptr.vmem [resolvable:$true] %s464_s25 }
  0x2f   : > { %s466_s28 = sshll.u32 %s463_s24, 4  ;;  %s451_s29 = scalar_lea.sflag [#allocation9], %s1041_s6  ;;  %s1077_s28 = int_to_ptr.hbm [resolvable:$true] %s466_s28 }
  0x30   : > { %v276_v12 = vsub.f32 %v247_v5, %v275_v7  ;;  %642 = vmatpush.msra.mxu2 %v265_v4  ;;  %v300_v13 = vand.u32 4294901760, %v299_v9  ;;  %v306_v14 = vand.u32 4294901760, %v305_v10  ;;  %v268_v15 = vsub.f32 %v244_v8, %v267_v11  ;;  %266 = vmatpush.msra.mxu0 %v265_v4  ;;  %s801_s21 = sshra.s32 %s485_s26, 4  ;;  %s807_s20 = scalar_lea.hbm %s1131_s3, 32  ;;  %s802_s21 = int_to_ptr.hbm [resolvable:$true] %s801_s21 }
  0x31   : > { %s803_s7 = scalar_lea.hbm %s802_s21, 16  ;;  %p808_p10 = scmp.lt.s32.totalorder %s802_s21, %s1131_s3 }
  0x32   : > { %v277_v16 = vand.u32 4294901760, %v276_v12  ;;  %335 = vmatpush.msrb.mxu2 %v299_v9  ;;  %v301_v17 = vsub.f32 %v299_v9, %v300_v13  ;;  %v307_v18 = vsub.f32 %v305_v10, %v306_v14  ;;  %v269_v19 = vand.u32 4294901760, %v268_v15  ;;  %398 = vmatpush.msrb.mxu0 %v300_v13  ;;  %p804_p1 = scmp.ne.s32.totalorder %s802_s21, %s803_s7  ;;  %p809_p12 = scmp.lt.s32.totalorder %s807_s20, %s803_s7 }
  0x34   : > { %v278_v20 = vsub.f32 %v276_v12, %v277_v16  ;;  %338 = vmatpush.msrb.mxu2 %v305_v10  ;;  %v302_v21 = vand.u32 4294901760, %v301_v17  ;;  %v308_v22 = vand.u32 4294901760, %v307_v18  ;;  %v270_v23 = vsub.f32 %v268_v15, %v269_v19  ;;  %402 = vmatpush.msrb.mxu0 %v306_v14  ;;  %p805_p4 = pnand %p804_p1, %p1014_p5  ;;  %p810_p13 = por %p809_p12, %p808_p10 }
  0x36   : > { %v279_v24 = vand.u32 4294901760, %v278_v20  ;;  %643 = vmatpush.msra.mxu3 %v302_v21  ;;  %303 = vmatpush.msra.mxu1 %v302_v21  ;;  %v271_v25 = vand.u32 4294901760, %v270_v23  ;;  %p806_p8 = pneg %p805_p4 }
  0x38   : > { %280 = vmatmul.f32.vlgmr.msra.gmra.mxu2 %v279_v24  ;;  %644 = vmatpush.msra.mxu3 %v308_v22  ;;  %p811_p0 = pnand %p810_p13, %p806_p8 }
  0x39   : > { %309 = vmatpush.msra.mxu1 %v308_v22  ;;  %315 = vmatmul.f32.vlgmr.msra.gmra.mxu3 %v275_v7 }
  0x3a   : > { %272 = vmatmul.f32.vlgmr.msra.gmra.mxu0 %v271_v25  ;;  %365 = vmatpush.msrb.mxu3 %v263_v3 }
  0x3b   : > { %311 = vmatmul.f32.vlgmr.msra.gmra.mxu1 %v267_v11 }
  0x3c   : > { %427 = vmatpush.msrb.mxu1 %v263_v3  ;;  %367 = vmatpush.msrb.mxu3 %v265_v4 }
  0x3e   : > { %429 = vmatpush.msrb.mxu1 %v265_v4 }
  0x40   : > { %341 = vmatmul.f32.vlgmr.msrb.gmra.mxu2 %v268_v15 }
  0x41   : > { %371 = vmatmul.f32.vlgmr.msrb.gmra.mxu3 %v269_v19 }
  0x42   : > { %404 = vmatmul.f32.vlgmr.msrb.gmra.mxu0 %v267_v11 }
  0x43   : > { %431 = vmatmul.f32.vlgmr.msrb.gmra.mxu1 %v267_v11 }
  0x48   : > { %346 = vmatmul.f32.gmra.mxu2 %v276_v12 }
  0x49   : > { %377 = vmatmul.f32.gmra.mxu3 %v277_v16 }
  0x4a   : > { %408 = vmatmul.f32.gmra.mxu0 %v275_v7 }
  0x4b   : > { %435 = vmatmul.f32.gmra.mxu1 %v275_v7 }
  0xb7   : > { %v273_v26 = vpop.f32.mrf.mxu0 }
  0xb8   : > { %v312_v29 = vpop.f32.mrf.mxu1 }
  0xb9   : > { %v313_v30 = vadd.f32 %v312_v29, %v273_v26 }
  0xbb   : > { %v281_v27 = vpop.f32.mrf.mxu2 }
  0xbc   : > { %v316_v28 = vpop.f32.mrf.mxu3 }
  0xbd   : > { %v317_v38 = vadd.f32 %v316_v28, %v281_v27 }
  0xbf   : > { %v405_v32 = vpop.f32.mrf.mxu0 }
  0xc0   : > { %v432_v35 = vpop.f32.mrf.mxu1 }
  0xc3   : > { %v342_v31 = vpop.f32.mrf.mxu2 }
  0xc4   : > { %v343_v33 = vadd.f32 %v342_v31, %v313_v30  ;;  %v372_v34 = vpop.f32.mrf.mxu3 }
  0xc6   : > { %v373_v36 = vadd.f32 %v372_v34, %v343_v33 }
  0xc7   : > { %v409_v44 = vpop.f32.mrf.mxu0 }
  0xc8   : > { %v406_v37 = vadd.f32 %v405_v32, %v373_v36  ;;  %v436_v46 = vpop.f32.mrf.mxu1 }
  0xca   : > { %v433_v39 = vadd.f32 %v432_v35, %v406_v37 }
  0xcb   : > { %v347_v40 = vpop.f32.mrf.mxu2 }
  0xcc   : > { %v439_v41 = vsub.f32 %v1054_v1, %v433_v39  ;;  %443 = vst [vmem:[%s237_s22] sm:$0xff] %v433_v39  ;;  %v348_v42 = vadd.f32 %v347_v40, %v317_v38  ;;  %v378_v43 = vpop.f32.mrf.mxu3 }
  0xce   : > { %441 = vst [vmem:[%s1070_s15] sm:$0xff] %v439_v41  ;;  %v379_v45 = vadd.f32 %v378_v43, %v348_v42 }
  0xd0   : > { %v410_v47 = vadd.f32 %v409_v44, %v379_v45 }
  0xd2   : > { %v437_v48 = vadd.f32 %v436_v46, %v410_v47 }
  0xd4   : > { %v440_v49 = vsub.f32 %v1052_v0, %v437_v48  ;;  %444 = vst [vmem:[%s237_s22 + $0x8] sm:$0xff] %v437_v48 }
  0xd5   : > { %814 = shalt.err (!%p811_p0)
}
  0xd6   : > { %s910_s22 = smov 128   ;;  %s911_s4 = smov 8   ;;  %442 = vst [vmem:[%s1070_s15 + $0x8] sm:$0xff] %v440_v49 }
  0xd7   : > { %652 = dma.vmem_to_hbm [thread:$0]  (%p1014_p5), %s483_s10, 256, %s485_s26, %s451_s29, %s910_s22, %s910_s22, %s911_s4  }
  0xd8   : > { %s446_s11 = scalar_lea.sflag [#allocation4], %s1041_s6  ;;  %s829_s19 = sshra.s32 %s1077_s28, 4  ;;  %s830_s19 = int_to_ptr.hbm [resolvable:$true] %s829_s19 }
  0xd9   : > { %s831_s24 = scalar_lea.hbm %s830_s19, 16  ;;  %s835_s9 = scalar_lea.hbm %s1130_s2, 32 }
  0xda   : > { %p832_p3 = scmp.ne.s32.totalorder %s830_s19, %s831_s24  ;;  %p836_p2 = scmp.lt.s32.totalorder %s830_s19, %s1130_s2 }
  0xdb   : > { %p837_p1 = scmp.lt.s32.totalorder %s835_s9, %s831_s24 }
  0xdc   : > { %p833_p7 = pnand %p832_p3, %p1014_p5 }
  0xdd   : > { %p838_p4 = por %p837_p1, %p836_p2 }
  0xde   : > { %p834_p9 = pneg %p833_p7 }
  0xe0   : > { %p839_p8 = pnand %p838_p4, %p834_p9 }
  0xe2   : > { %842 = shalt.err (!%p839_p8)
}
  0xe3   : > { %651 = dma.vmem_to_hbm [thread:$0]  (%p1014_p5), %s1074_s25, 256, %s1077_s28, %s446_s11, %s910_s22, %s910_s22, %s911_s4  }
  0xe4 PF: > { %s499_s6 = sand.u32 1, %s885_s12   ;;  %p664_p10 = pnand %p621_p11, %p981_p6 }
  0xe5   : > { %s500_s10 = scalar_lea.sflag [#allocation4], %s499_s6 }
  0xe6   : > { %p665_p12 = pneg %p664_p10 }
  0xe8   : > { %876 = dma.done.wait (%p665_p12), %s500_s10, 256  }
  0xe9   : > { %878 = vsyncadd (%p665_p12), %s500_s10, 4294967040  ;;  %s510_s15 = scalar_lea.sflag [#allocation9], %s499_s6 }
  0xea   : > { %880 = dma.done.wait (%p665_p12), %s510_s15, 256  }
  0xeb   : > { %882 = vsyncadd (%p665_p12), %s510_s15, 4294967040  ;;  %s24_s17 = sadd.s32 1, %s905_s17   ;;  %s1143_s12 = smov %s889_s13 }
  0xec   : > { %p21_p13 = scmp.ge.s32.totalorder %s24_s17, 4   ;;  %s1144_s13 = smov %s893_s14 }
  0xed   : > { %s1145_s14 = smov %s1023_s18  ;;  %s1146_s15 = smov %s901_s16 }
  0xee   : > { %s1147_s16 = smov %s1149_s5  ;;  %23 = sbr.rel (!%p21_p13) target bundleno = 11 (0xb), region = 95 }
  0xf3   :  { %516 = vsyncpa [#allocation3], 1 }
  0xf4   :  { %518 = vsyncpa [#allocation3 + $0x1], 1 }
  0xf5   :  { %519 = vsyncpa [#allocation6], 1 }
  0xf6   :  { %521 = vsyncpa [#allocation6 + $0x1], 1 }
  0xf7   :  { %522 = vsyncpa [#allocation4], 1 }
  0xf8   :  { %524 = vsyncpa [#allocation4 + $0x1], 1 }
  0xf9   :  { %525 = vsyncpa [#allocation9], 1 }
  0xfa   :  { %527 = vsyncpa [#allocation9 + $0x1], 1 }

</bundles_post_ra>
